<compile_context>
chip_gen: v7x
topology: tpu7x:2x2x1
jax: 0.10.0
libtpu: 0.0.40
codegen_flags: <defaults>
</compile_context>

<pallas_src>
import functools
import math

import jax
import jax.numpy as jnp
from jax import lax
from jax.experimental import pallas as pl
from jax.experimental.pallas import tpu as pltpu

_LN_EPS = 1e-5

# Kernel weight argument order (all full-array resident blocks):
#   ln1_g, ln1_b            (1, D)    f32
#   wqkv, bqkv              (D, 3D) bf16 / (1, 3D) f32
#   wo, bo                  (D, D)  bf16 / (1, D)  f32
#   ln2_g, ln2_b            (1, D)    f32
#   wfc, bfc                (D, 4D) bf16 / (1, 4D) f32
#   wproj, bproj            (4D, D) bf16 / (1, D)  f32


# ------------------------------ kernel -------------------------------------
def _resblock_kernel(x_ref,
                     ln1_g, ln1_b, wqkv, bqkv, wo, bo,
                     ln2_g, ln2_b, wfc, bfc, wproj, bproj,
                     o_ref, *, n_head, seq_len):
    """One ResidualAttentionBlock on a [Nb, Lp, D] tile."""
    Nb, Lp, D = x_ref.shape
    H = n_head
    hd = D // H
    R = Nb * Lp
    scale = 1.0 / math.sqrt(hd)

    x = x_ref[...].astype(jnp.float32)
    x2 = x.reshape(R, D)                           # residual stream, f32 (Lp%8==0)

    def layer_norm(v, g_ref, b_ref):               # f32 statistics
        mu = jnp.mean(v, axis=-1, keepdims=True)
        var = jnp.mean(jnp.square(v - mu), axis=-1, keepdims=True)
        return (v - mu) * lax.rsqrt(var + _LN_EPS) * g_ref[...] + b_ref[...]

    # ---------- pre-LN fused-QKV multi-head self-attention -----------------
    h1 = layer_norm(x2, ln1_g, ln1_b).astype(jnp.bfloat16)     # cast once
    qkv = jnp.dot(h1, wqkv[...], preferred_element_type=jnp.float32) + bqkv[...]
    qkv = qkv.astype(jnp.bfloat16)                 # [R, 3D] bf16 from here on

    def split_heads(col0):
        # static lane slices -> fused (H, Nb) batch dim: [H*Nb, Lp, hd] (bf16)
        parts = [qkv[:, col0 + h * hd: col0 + (h + 1) * hd]
                 .reshape(1, Nb, Lp, hd) for h in range(H)]
        return jnp.concatenate(parts, axis=0).reshape(H * Nb, Lp, hd)

    q = split_heads(0)
    k = split_heads(D)
    v = split_heads(2 * D)

    # one batched contraction over the fused (H*Nb) batch dim
    s = jnp.einsum("bld,bmd->blm", q, k,
                   preferred_element_type=jnp.float32) * scale   # [H*Nb,Lp,Lp] f32
    if seq_len != Lp:                               # mask padded key positions
        key_pos = lax.broadcasted_iota(jnp.int32, (1, 1, Lp), 2)
        s = jnp.where(key_pos < seq_len, s, -1e30)
    s = s - jnp.max(s, axis=-1, keepdims=True)
    e = jnp.exp(s)
    p = (e * pl.reciprocal(jnp.sum(e, axis=-1, keepdims=True),
                           approx=True)).astype(jnp.bfloat16)
    o = jnp.einsum("blm,bmd->bld", p, v,
                   preferred_element_type=jnp.float32)           # [H*Nb,Lp,hd]
    o = o.astype(jnp.bfloat16).reshape(H, R, hd)                 # layout-preserving
    attn = jnp.concatenate([o[h] for h in range(H)], axis=-1)    # [R, D] merge
    x1 = x2 + jnp.dot(attn, wo[...],
                      preferred_element_type=jnp.float32) + bo[...]

    # ---------- pre-LN MLP with QuickGELU -----------------------------------
    h2 = layer_norm(x1, ln2_g, ln2_b).astype(jnp.bfloat16)
    u = jnp.dot(h2, wfc[...], preferred_element_type=jnp.float32) + bfc[...]
    # QuickGELU kept in f32 (correct on v5e; bf16 variant is a v6e/v7x option)
    u = u * jax.nn.sigmoid(1.702 * u)
    m = jnp.dot(u.astype(jnp.bfloat16), wproj[...],
                preferred_element_type=jnp.float32) + bproj[...]

    o_ref[...] = (x1 + m).reshape(Nb, Lp, D).astype(o_ref.dtype)


# ------------------------------ wrapper -------------------------------------
def _weight_shapes(D):
    return [(1, D), (1, D),
            (D, 3 * D), (1, 3 * D),
            (D, D), (1, D),
            (1, D), (1, D),
            (D, 4 * D), (1, 4 * D),
            (4 * D, D), (1, D)]


def _vmem_cap_bytes():
    # hardware query only; does not change kernel semantics
    try:
        info = pltpu.get_tpu_info()
        return int(getattr(info, "vmem_capacity_bytes", 64 << 20))
    except Exception:
        return 64 << 20


def _build_resblock_call(Np, Lp, D, dtype, n_head, nb, seq_len):
    H = n_head
    grid = (Np // nb,)
    R = nb * Lp
    Rtot = Np * Lp

    # ---- cost estimate (whole call) ----
    flops = 24 * Rtot * D * D + 4 * Np * Lp * Lp * D
    transc = Np * H * Lp * Lp + Rtot * 4 * D
    w_bytes = 2 * (3 + 1 + 4 + 4) * D * D + 4 * 13 * D          # bf16 mats + f32 rest
    io_bytes = 2 * Np * Lp * D * dtype.itemsize

    # ---- VMEM budget: weights (double-buffered) + x/out buffers + live slabs
    act_bytes = (R * D * 64                      # residual f32 + qkv/attn bf16 slabs
                 + R * 4 * D * 12                # [R,4D] GELU slab (f32 + bf16 copies)
                 + nb * H * Lp * Lp * 8)         # scores f32 + probs bf16
    vmem_need = 2 * w_bytes + 4 * nb * Lp * D * dtype.itemsize + act_bytes
    cap = max(_vmem_cap_bytes() - (8 << 20), 32 << 20)          # headroom, v7x-safe
    vmem_limit = int(min(max(vmem_need, 32 << 20), cap))

    def _const_map(ndim):
        return lambda b, n=ndim: (0,) * n

    in_specs = [pl.BlockSpec((nb, Lp, D), lambda b: (b, 0, 0))]
    in_specs += [pl.BlockSpec(s, _const_map(len(s))) for s in _weight_shapes(D)]

    return pl.pallas_call(
        functools.partial(_resblock_kernel, n_head=n_head, seq_len=seq_len),
        out_shape=jax.ShapeDtypeStruct((Np, Lp, D), dtype),
        grid=grid,
        in_specs=in_specs,
        out_specs=pl.BlockSpec((nb, Lp, D), lambda b: (b, 0, 0)),
        compiler_params=pltpu.CompilerParams(
            dimension_semantics=("parallel",),
            vmem_limit_bytes=vmem_limit),
        cost_estimate=pl.CostEstimate(
            flops=int(flops), transcendentals=int(transc),
            bytes_accessed=int(w_bytes + io_bytes)),
    )


@functools.lru_cache(maxsize=None)
def _get_layer_fn(Np, Lp, D, n_head, nb, seq_len, dtype_str):
    """Build + jit the per-layer callable once per shape configuration."""
    dtype = jnp.dtype(dtype_str)
    call = _build_resblock_call(Np, Lp, D, dtype, n_head, nb, seq_len)
    return jax.jit(call)


def _pick_nb(N, Lp):
    nb = max(1, min(N, pl.cdiv(256, Lp)))      # aim ~256 rows per step (MXU M dim)
    if N >= 2 and pl.cdiv(N, nb) < 2:          # keep >=2 grid steps for 2-TC chips
        nb = pl.cdiv(N, 2)
    return nb


def prepare_block_weights(p):
    """Stage one layer's weights: fused QKV, matmul weights in bf16."""
    f32, bf16 = jnp.float32, jnp.bfloat16
    wqkv = jnp.concatenate([p["wq"], p["wk"], p["wv"]], axis=1).astype(bf16)
    bqkv = jnp.concatenate([p["bq"], p["bk"], p["bv"]], axis=1).astype(f32)
    return (p["ln1_g"].astype(f32), p["ln1_b"].astype(f32),
            wqkv, bqkv,
            p["wo"].astype(bf16), p["bo"].astype(f32),
            p["ln2_g"].astype(f32), p["ln2_b"].astype(f32),
            p["wfc"].astype(bf16), p["bfc"].astype(f32),
            p["wproj"].astype(bf16), p["bproj"].astype(f32))


def transformer_forward(x_lnd, all_params, n_head):
    """Transformer.forward (text path): x [L, N, D] -> [L, N, D]."""
    L, N, D = x_lnd.shape
    x = jnp.transpose(x_lnd, (1, 0, 2))            # [N, L, D]

    Lp = max(8, ((L + 7) // 8) * 8)                # keep kernel reshapes tile-aligned
    if Lp != L:
        x = jnp.pad(x, ((0, 0), (0, Lp - L), (0, 0)))

    nb = _pick_nb(N, Lp)
    steps = pl.cdiv(N, nb)
    if steps > 1 and steps % 2:                    # even grid -> balanced 2-TC chips
        steps += 1
    Np = steps * nb
    if Np != N:
        x = jnp.pad(x, ((0, Np - N), (0, 0), (0, 0)))

    layer_fn = _get_layer_fn(Np, Lp, D, n_head, nb, L, str(x.dtype))
    staged = [prepare_block_weights(p) for p in all_params]
    for ws in staged:                              # sequential resblocks
        x = layer_fn(x, *ws)

    x = x[:N, :L]
    return jnp.transpose(x, (1, 0, 2))             # back to [L, N, D]


# ---------------- deterministic parameter init (synthetic) ------------------
def init_block_params(key, D):
    ks = jax.random.split(key, 12)
    s = 0.05
    return {
        "ln1_g": jnp.ones((1, D), jnp.float32),
        "ln1_b": jnp.zeros((1, D), jnp.float32),
        "wq": jax.random.normal(ks[0], (D, D), jnp.float32) * s,
        "wk": jax.random.normal(ks[1], (D, D), jnp.float32) * s,
        "wv": jax.random.normal(ks[2], (D, D), jnp.float32) * s,
        "bq": jax.random.normal(ks[3], (1, D), jnp.float32) * s,
        "bk": jax.random.normal(ks[4], (1, D), jnp.float32) * s,
        "bv": jax.random.normal(ks[5], (1, D), jnp.float32) * s,
        "wo": jax.random.normal(ks[6], (D, D), jnp.float32) * s,
        "bo": jax.random.normal(ks[7], (1, D), jnp.float32) * s,
        "ln2_g": jnp.ones((1, D), jnp.float32),
        "ln2_b": jnp.zeros((1, D), jnp.float32),
        "wfc": jax.random.normal(ks[8], (D, 4 * D), jnp.float32) * s,
        "bfc": jax.random.normal(ks[9], (1, 4 * D), jnp.float32) * s,
        "wproj": jax.random.normal(ks[10], (4 * D, D), jnp.float32) * s,
        "bproj": jax.random.normal(ks[11], (1, D), jnp.float32) * s,
    }


# ---------------- pure-JAX f32 reference (correctness check) ----------------
def ref_block(x, p, n_head):
    N, L, D = x.shape
    hd = D // n_head

    def ln(v, g, b):
        mu = v.mean(-1, keepdims=True)
        var = ((v - mu) ** 2).mean(-1, keepdims=True)
        return (v - mu) / jnp.sqrt(var + _LN_EPS) * g + b

    h = ln(x, p["ln1_g"][0], p["ln1_b"][0])
    q = (h @ p["wq"] + p["bq"][0]).reshape(N, L, n_head, hd)
    k = (h @ p["wk"] + p["bk"][0]).reshape(N, L, n_head, hd)
    v = (h @ p["wv"] + p["bv"][0]).reshape(N, L, n_head, hd)
    s = jnp.einsum("nlhd,nmhd->nhlm", q, k) / math.sqrt(hd)
    a = jnp.einsum("nhlm,nmhd->nlhd", jax.nn.softmax(s, axis=-1), v)
    a = a.reshape(N, L, D) @ p["wo"] + p["bo"][0]
    x1 = x + a
    h2 = ln(x1, p["ln2_g"][0], p["ln2_b"][0])
    u = h2 @ p["wfc"] + p["bfc"][0]
    u = u * jax.nn.sigmoid(1.702 * u)
    return x1 + u @ p["wproj"] + p["bproj"][0]


if __name__ == "__main__":
    # small shapes: width=32, heads=4, layers=2, seq=8, batch=2
    L, N, D, H, LAYERS = 8, 2, 32, 4, 2

    key = jax.random.PRNGKey(0)
    kx, kp = jax.random.split(key)
    x = jax.random.normal(kx, (L, N, D), jnp.float32)   # PyTorch seq-first layout
    all_params = [init_block_params(k, D) for k in jax.random.split(kp, LAYERS)]

    out = transformer_forward(x, all_params, H)
    out = jax.block_until_ready(out)

    # pure-JAX f32 reference; kernel uses bf16 matmul operands + approx recip,
    # so the tolerance is loosened accordingly.
    ref = jnp.transpose(x, (1, 0, 2))
    for p in all_params:
        ref = ref_block(ref, p, H)
    ref = jnp.transpose(ref, (1, 0, 2))
    err = float(jnp.max(jnp.abs(out - ref)))
    assert err < 5e-2, err

    print("KERNEL_OK")
</pallas_src>

<mosaic_0001>
module attributes {stable_mosaic.version = 11 : i64} {
  func.func @_resblock_kernel(%arg0: i32, %arg1: memref<1x8x32xf32, #tpu.memory_space<vmem>>, %arg2: memref<1x32xf32, #tpu.memory_space<vmem>>, %arg3: memref<1x32xf32, #tpu.memory_space<vmem>>, %arg4: memref<32x96xbf16, #tpu.memory_space<vmem>>, %arg5: memref<1x96xf32, #tpu.memory_space<vmem>>, %arg6: memref<32x32xbf16, #tpu.memory_space<vmem>>, %arg7: memref<1x32xf32, #tpu.memory_space<vmem>>, %arg8: memref<1x32xf32, #tpu.memory_space<vmem>>, %arg9: memref<1x32xf32, #tpu.memory_space<vmem>>, %arg10: memref<32x128xbf16, #tpu.memory_space<vmem>>, %arg11: memref<1x128xf32, #tpu.memory_space<vmem>>, %arg12: memref<128x32xbf16, #tpu.memory_space<vmem>>, %arg13: memref<1x32xf32, #tpu.memory_space<vmem>>, %arg14: memref<1x8x32xf32, #tpu.memory_space<vmem>>) attributes {dimension_semantics = [#tpu.dimension_semantics<parallel>], iteration_bounds = array<i64: 2>, scalar_prefetch = 0 : i64, scratch_operands = 0 : i64, tpu.core_type = #tpu.core_type<tc>, window_params = [{transform_indices = @transform_0, window_bounds = array<i64: 1, 8, 32>}, {pipeline_mode = #tpu.pipeline_mode<synchronous>, transform_indices = @transform_1, window_bounds = array<i64: 1, 32>}, {pipeline_mode = #tpu.pipeline_mode<synchronous>, transform_indices = @transform_2, window_bounds = array<i64: 1, 32>}, {pipeline_mode = #tpu.pipeline_mode<synchronous>, transform_indices = @transform_3, window_bounds = array<i64: 32, 96>}, {pipeline_mode = #tpu.pipeline_mode<synchronous>, transform_indices = @transform_4, window_bounds = array<i64: 1, 96>}, {pipeline_mode = #tpu.pipeline_mode<synchronous>, transform_indices = @transform_5, window_bounds = array<i64: 32, 32>}, {pipeline_mode = #tpu.pipeline_mode<synchronous>, transform_indices = @transform_6, window_bounds = array<i64: 1, 32>}, {pipeline_mode = #tpu.pipeline_mode<synchronous>, transform_indices = @transform_7, window_bounds = array<i64: 1, 32>}, {pipeline_mode = #tpu.pipeline_mode<synchronous>, transform_indices = @transform_8, window_bounds = array<i64: 1, 32>}, {pipeline_mode = #tpu.pipeline_mode<synchronous>, transform_indices = @transform_9, window_bounds = array<i64: 32, 128>}, {pipeline_mode = #tpu.pipeline_mode<synchronous>, transform_indices = @transform_10, window_bounds = array<i64: 1, 128>}, {pipeline_mode = #tpu.pipeline_mode<synchronous>, transform_indices = @transform_11, window_bounds = array<i64: 128, 32>}, {pipeline_mode = #tpu.pipeline_mode<synchronous>, transform_indices = @transform_12, window_bounds = array<i64: 1, 32>}, {transform_indices = @transform_13, window_bounds = array<i64: 1, 8, 32>}]} {
    %c0 = arith.constant 0 : index
    %c0_0 = arith.constant 0 : index
    %c0_1 = arith.constant 0 : index
    %0 = vector.load %arg1[%c0, %c0_0, %c0_1] : memref<1x8x32xf32, #tpu.memory_space<vmem>>, vector<1x8x32xf32>
    %1 = vector.shape_cast %0 : vector<1x8x32xf32> to vector<8x32xf32>
    %cst = arith.constant dense<0.000000e+00> : vector<8xf32>
    %2 = vector.multi_reduction <add>, %1, %cst [1] : vector<8x32xf32> to vector<8xf32>
    %3 = vector.shape_cast %2 : vector<8xf32> to vector<8x1xf32>
    %cst_2 = arith.constant 3.200000e+01 : f32
    %4 = vector.broadcast %cst_2 : f32 to vector<8x1xf32>
    %5 = arith.divf %3, %4 : vector<8x1xf32>
    %6 = vector.broadcast %5 : vector<8x1xf32> to vector<8x32xf32>
    %7 = arith.subf %1, %6 : vector<8x32xf32>
    %8 = arith.mulf %7, %7 : vector<8x32xf32>
    %cst_3 = arith.constant dense<0.000000e+00> : vector<8xf32>
    %9 = vector.multi_reduction <add>, %8, %cst_3 [1] : vector<8x32xf32> to vector<8xf32>
    %10 = vector.shape_cast %9 : vector<8xf32> to vector<8x1xf32>
    %cst_4 = arith.constant 3.200000e+01 : f32
    %11 = vector.broadcast %cst_4 : f32 to vector<8x1xf32>
    %12 = arith.divf %10, %11 : vector<8x1xf32>
    %13 = vector.broadcast %5 : vector<8x1xf32> to vector<8x32xf32>
    %14 = arith.subf %1, %13 : vector<8x32xf32>
    %cst_5 = arith.constant 9.99999974E-6 : f32
    %15 = vector.broadcast %cst_5 : f32 to vector<8x1xf32>
    %16 = arith.addf %12, %15 : vector<8x1xf32>
    %17 = math.rsqrt %16 : vector<8x1xf32>
    %18 = vector.broadcast %17 : vector<8x1xf32> to vector<8x32xf32>
    %19 = arith.mulf %14, %18 : vector<8x32xf32>
    %c0_6 = arith.constant 0 : index
    %c0_7 = arith.constant 0 : index
    %20 = vector.load %arg2[%c0_6, %c0_7] : memref<1x32xf32, #tpu.memory_space<vmem>>, vector<1x32xf32>
    %21 = vector.broadcast %20 : vector<1x32xf32> to vector<8x32xf32>
    %22 = arith.mulf %19, %21 : vector<8x32xf32>
    %c0_8 = arith.constant 0 : index
    %c0_9 = arith.constant 0 : index
    %23 = vector.load %arg3[%c0_8, %c0_9] : memref<1x32xf32, #tpu.memory_space<vmem>>, vector<1x32xf32>
    %24 = vector.broadcast %23 : vector<1x32xf32> to vector<8x32xf32>
    %25 = arith.addf %22, %24 : vector<8x32xf32>
    %26 = arith.truncf %25 : vector<8x32xf32> to vector<8x32xbf16>
    %c0_10 = arith.constant 0 : index
    %c0_11 = arith.constant 0 : index
    %27 = vector.load %arg4[%c0_10, %c0_11] : memref<32x96xbf16, #tpu.memory_space<vmem>>, vector<32x96xbf16>
    %cst_12 = arith.constant dense<0.000000e+00> : vector<8x96xf32>
    %28 = tpu.matmul %26, %27, %cst_12 {dimension_numbers = #tpu.dot_dimension_numbers<[1], [0], [0], [1], [0, 0, 1, 1], [], []>} : vector<8x32xbf16>, vector<32x96xbf16>, vector<8x96xf32> -> vector<8x96xf32>
    %c0_13 = arith.constant 0 : index
    %c0_14 = arith.constant 0 : index
    %29 = vector.load %arg5[%c0_13, %c0_14] : memref<1x96xf32, #tpu.memory_space<vmem>>, vector<1x96xf32>
    %30 = vector.broadcast %29 : vector<1x96xf32> to vector<8x96xf32>
    %31 = arith.addf %28, %30 : vector<8x96xf32>
    %32 = arith.truncf %31 : vector<8x96xf32> to vector<8x96xbf16>
    %33 = vector.extract_strided_slice %32 {offsets = [0, 0], sizes = [8, 8], strides = [1, 1]} : vector<8x96xbf16> to vector<8x8xbf16>
    %34 = vector.shape_cast %33 : vector<8x8xbf16> to vector<1x1x8x8xbf16>
    %35 = vector.extract_strided_slice %32 {offsets = [0, 8], sizes = [8, 8], strides = [1, 1]} : vector<8x96xbf16> to vector<8x8xbf16>
    %36 = vector.shape_cast %35 : vector<8x8xbf16> to vector<1x1x8x8xbf16>
    %37 = vector.extract_strided_slice %32 {offsets = [0, 16], sizes = [8, 8], strides = [1, 1]} : vector<8x96xbf16> to vector<8x8xbf16>
    %38 = vector.shape_cast %37 : vector<8x8xbf16> to vector<1x1x8x8xbf16>
    %39 = vector.extract_strided_slice %32 {offsets = [0, 24], sizes = [8, 8], strides = [1, 1]} : vector<8x96xbf16> to vector<8x8xbf16>
    %40 = vector.shape_cast %39 : vector<8x8xbf16> to vector<1x1x8x8xbf16>
    %41 = tpu.concatenate %34, %36, %38, %40 in 0 : vector<1x1x8x8xbf16>, vector<1x1x8x8xbf16>, vector<1x1x8x8xbf16>, vector<1x1x8x8xbf16> -> vector<4x1x8x8xbf16>
    %42 = vector.shape_cast %41 : vector<4x1x8x8xbf16> to vector<4x8x8xbf16>
    %43 = vector.extract_strided_slice %32 {offsets = [0, 32], sizes = [8, 8], strides = [1, 1]} : vector<8x96xbf16> to vector<8x8xbf16>
    %44 = vector.shape_cast %43 : vector<8x8xbf16> to vector<1x1x8x8xbf16>
    %45 = vector.extract_strided_slice %32 {offsets = [0, 40], sizes = [8, 8], strides = [1, 1]} : vector<8x96xbf16> to vector<8x8xbf16>
    %46 = vector.shape_cast %45 : vector<8x8xbf16> to vector<1x1x8x8xbf16>
    %47 = vector.extract_strided_slice %32 {offsets = [0, 48], sizes = [8, 8], strides = [1, 1]} : vector<8x96xbf16> to vector<8x8xbf16>
    %48 = vector.shape_cast %47 : vector<8x8xbf16> to vector<1x1x8x8xbf16>
    %49 = vector.extract_strided_slice %32 {offsets = [0, 56], sizes = [8, 8], strides = [1, 1]} : vector<8x96xbf16> to vector<8x8xbf16>
    %50 = vector.shape_cast %49 : vector<8x8xbf16> to vector<1x1x8x8xbf16>
    %51 = tpu.concatenate %44, %46, %48, %50 in 0 : vector<1x1x8x8xbf16>, vector<1x1x8x8xbf16>, vector<1x1x8x8xbf16>, vector<1x1x8x8xbf16> -> vector<4x1x8x8xbf16>
    %52 = vector.shape_cast %51 : vector<4x1x8x8xbf16> to vector<4x8x8xbf16>
    %53 = vector.extract_strided_slice %32 {offsets = [0, 64], sizes = [8, 8], strides = [1, 1]} : vector<8x96xbf16> to vector<8x8xbf16>
    %54 = vector.shape_cast %53 : vector<8x8xbf16> to vector<1x1x8x8xbf16>
    %55 = vector.extract_strided_slice %32 {offsets = [0, 72], sizes = [8, 8], strides = [1, 1]} : vector<8x96xbf16> to vector<8x8xbf16>
    %56 = vector.shape_cast %55 : vector<8x8xbf16> to vector<1x1x8x8xbf16>
    %57 = vector.extract_strided_slice %32 {offsets = [0, 80], sizes = [8, 8], strides = [1, 1]} : vector<8x96xbf16> to vector<8x8xbf16>
    %58 = vector.shape_cast %57 : vector<8x8xbf16> to vector<1x1x8x8xbf16>
    %59 = vector.extract_strided_slice %32 {offsets = [0, 88], sizes = [8, 8], strides = [1, 1]} : vector<8x96xbf16> to vector<8x8xbf16>
    %60 = vector.shape_cast %59 : vector<8x8xbf16> to vector<1x1x8x8xbf16>
    %61 = tpu.concatenate %54, %56, %58, %60 in 0 : vector<1x1x8x8xbf16>, vector<1x1x8x8xbf16>, vector<1x1x8x8xbf16>, vector<1x1x8x8xbf16> -> vector<4x1x8x8xbf16>
    %62 = vector.shape_cast %61 : vector<4x1x8x8xbf16> to vector<4x8x8xbf16>
    "tpu.trace_start"() <{level = 10 : i32, message = "bld,bmd->blm"}> : () -> ()
    %cst_15 = arith.constant dense<0.000000e+00> : vector<4x8x8xf32>
    %63 = tpu.matmul %42, %52, %cst_15 {dimension_numbers = #tpu.dot_dimension_numbers<[2], [2], [1], [1], [0, 0, 0, 1, 1, 1], [0], [0]>} : vector<4x8x8xbf16>, vector<4x8x8xbf16>, vector<4x8x8xf32> -> vector<4x8x8xf32>
    "tpu.trace_stop"() : () -> ()
    %cst_16 = arith.constant 0.353553385 : f32
    %64 = vector.broadcast %cst_16 : f32 to vector<4x8x8xf32>
    %65 = arith.mulf %63, %64 : vector<4x8x8xf32>
    %cst_17 = arith.constant dense<0xFF800000> : vector<4x8xf32>
    %66 = vector.multi_reduction <maximumf>, %65, %cst_17 [2] : vector<4x8x8xf32> to vector<4x8xf32>
    %67 = vector.shape_cast %66 : vector<4x8xf32> to vector<4x8x1xf32>
    %68 = vector.broadcast %67 : vector<4x8x1xf32> to vector<4x8x8xf32>
    %69 = arith.subf %65, %68 : vector<4x8x8xf32>
    %70 = math.exp %69 : vector<4x8x8xf32>
    %cst_18 = arith.constant dense<0.000000e+00> : vector<4x8xf32>
    %71 = vector.multi_reduction <add>, %70, %cst_18 [2] : vector<4x8x8xf32> to vector<4x8xf32>
    %72 = vector.shape_cast %71 : vector<4x8xf32> to vector<4x8x1xf32>
    %73 = tpu.reciprocal %72 {approx = true} : vector<4x8x1xf32> -> vector<4x8x1xf32>
    %74 = vector.broadcast %73 : vector<4x8x1xf32> to vector<4x8x8xf32>
    %75 = arith.mulf %70, %74 : vector<4x8x8xf32>
    %76 = arith.truncf %75 : vector<4x8x8xf32> to vector<4x8x8xbf16>
    "tpu.trace_start"() <{level = 10 : i32, message = "blm,bmd->bld"}> : () -> ()
    %cst_19 = arith.constant dense<0.000000e+00> : vector<4x8x8xf32>
    %77 = tpu.matmul %76, %62, %cst_19 {dimension_numbers = #tpu.dot_dimension_numbers<[2], [1], [1], [2], [0, 0, 0, 1, 1, 2], [0], [0]>} : vector<4x8x8xbf16>, vector<4x8x8xbf16>, vector<4x8x8xf32> -> vector<4x8x8xf32>
    "tpu.trace_stop"() : () -> ()
    %78 = arith.truncf %77 : vector<4x8x8xf32> to vector<4x8x8xbf16>
    %79 = vector.extract_strided_slice %78 {offsets = [0, 0, 0], sizes = [1, 8, 8], strides = [1, 1, 1]} : vector<4x8x8xbf16> to vector<1x8x8xbf16>
    %80 = vector.shape_cast %79 : vector<1x8x8xbf16> to vector<8x8xbf16>
    %81 = vector.extract_strided_slice %78 {offsets = [1, 0, 0], sizes = [1, 8, 8], strides = [1, 1, 1]} : vector<4x8x8xbf16> to vector<1x8x8xbf16>
    %82 = vector.shape_cast %81 : vector<1x8x8xbf16> to vector<8x8xbf16>
    %83 = vector.extract_strided_slice %78 {offsets = [2, 0, 0], sizes = [1, 8, 8], strides = [1, 1, 1]} : vector<4x8x8xbf16> to vector<1x8x8xbf16>
    %84 = vector.shape_cast %83 : vector<1x8x8xbf16> to vector<8x8xbf16>
    %85 = vector.extract_strided_slice %78 {offsets = [3, 0, 0], sizes = [1, 8, 8], strides = [1, 1, 1]} : vector<4x8x8xbf16> to vector<1x8x8xbf16>
    %86 = vector.shape_cast %85 : vector<1x8x8xbf16> to vector<8x8xbf16>
    %87 = tpu.concatenate %80, %82, %84, %86 in 1 : vector<8x8xbf16>, vector<8x8xbf16>, vector<8x8xbf16>, vector<8x8xbf16> -> vector<8x32xbf16>
    %c0_20 = arith.constant 0 : index
    %c0_21 = arith.constant 0 : index
    %88 = vector.load %arg6[%c0_20, %c0_21] : memref<32x32xbf16, #tpu.memory_space<vmem>>, vector<32x32xbf16>
    %cst_22 = arith.constant dense<0.000000e+00> : vector<8x32xf32>
    %89 = tpu.matmul %87, %88, %cst_22 {dimension_numbers = #tpu.dot_dimension_numbers<[1], [0], [0], [1], [0, 0, 1, 1], [], []>} : vector<8x32xbf16>, vector<32x32xbf16>, vector<8x32xf32> -> vector<8x32xf32>
    %90 = arith.addf %1, %89 : vector<8x32xf32>
    %c0_23 = arith.constant 0 : index
    %c0_24 = arith.constant 0 : index
    %91 = vector.load %arg7[%c0_23, %c0_24] : memref<1x32xf32, #tpu.memory_space<vmem>>, vector<1x32xf32>
    %92 = vector.broadcast %91 : vector<1x32xf32> to vector<8x32xf32>
    %93 = arith.addf %90, %92 : vector<8x32xf32>
    %cst_25 = arith.constant dense<0.000000e+00> : vector<8xf32>
    %94 = vector.multi_reduction <add>, %93, %cst_25 [1] : vector<8x32xf32> to vector<8xf32>
    %95 = vector.shape_cast %94 : vector<8xf32> to vector<8x1xf32>
    %cst_26 = arith.constant 3.200000e+01 : f32
    %96 = vector.broadcast %cst_26 : f32 to vector<8x1xf32>
    %97 = arith.divf %95, %96 : vector<8x1xf32>
    %98 = vector.broadcast %97 : vector<8x1xf32> to vector<8x32xf32>
    %99 = arith.subf %93, %98 : vector<8x32xf32>
    %100 = arith.mulf %99, %99 : vector<8x32xf32>
    %cst_27 = arith.constant dense<0.000000e+00> : vector<8xf32>
    %101 = vector.multi_reduction <add>, %100, %cst_27 [1] : vector<8x32xf32> to vector<8xf32>
    %102 = vector.shape_cast %101 : vector<8xf32> to vector<8x1xf32>
    %cst_28 = arith.constant 3.200000e+01 : f32
    %103 = vector.broadcast %cst_28 : f32 to vector<8x1xf32>
    %104 = arith.divf %102, %103 : vector<8x1xf32>
    %105 = vector.broadcast %97 : vector<8x1xf32> to vector<8x32xf32>
    %106 = arith.subf %93, %105 : vector<8x32xf32>
    %cst_29 = arith.constant 9.99999974E-6 : f32
    %107 = vector.broadcast %cst_29 : f32 to vector<8x1xf32>
    %108 = arith.addf %104, %107 : vector<8x1xf32>
    %109 = math.rsqrt %108 : vector<8x1xf32>
    %110 = vector.broadcast %109 : vector<8x1xf32> to vector<8x32xf32>
    %111 = arith.mulf %106, %110 : vector<8x32xf32>
    %c0_30 = arith.constant 0 : index
    %c0_31 = arith.constant 0 : index
    %112 = vector.load %arg8[%c0_30, %c0_31] : memref<1x32xf32, #tpu.memory_space<vmem>>, vector<1x32xf32>
    %113 = vector.broadcast %112 : vector<1x32xf32> to vector<8x32xf32>
    %114 = arith.mulf %111, %113 : vector<8x32xf32>
    %c0_32 = arith.constant 0 : index
    %c0_33 = arith.constant 0 : index
    %115 = vector.load %arg9[%c0_32, %c0_33] : memref<1x32xf32, #tpu.memory_space<vmem>>, vector<1x32xf32>
    %116 = vector.broadcast %115 : vector<1x32xf32> to vector<8x32xf32>
    %117 = arith.addf %114, %116 : vector<8x32xf32>
    %118 = arith.truncf %117 : vector<8x32xf32> to vector<8x32xbf16>
    %c0_34 = arith.constant 0 : index
    %c0_35 = arith.constant 0 : index
    %119 = vector.load %arg10[%c0_34, %c0_35] : memref<32x128xbf16, #tpu.memory_space<vmem>>, vector<32x128xbf16>
    %cst_36 = arith.constant dense<0.000000e+00> : vector<8x128xf32>
    %120 = tpu.matmul %118, %119, %cst_36 {dimension_numbers = #tpu.dot_dimension_numbers<[1], [0], [0], [1], [0, 0, 1, 1], [], []>} : vector<8x32xbf16>, vector<32x128xbf16>, vector<8x128xf32> -> vector<8x128xf32>
    %c0_37 = arith.constant 0 : index
    %c0_38 = arith.constant 0 : index
    %121 = vector.load %arg11[%c0_37, %c0_38] : memref<1x128xf32, #tpu.memory_space<vmem>>, vector<1x128xf32>
    %122 = vector.broadcast %121 : vector<1x128xf32> to vector<8x128xf32>
    %123 = arith.addf %120, %122 : vector<8x128xf32>
    %cst_39 = arith.constant 1.702000e+00 : f32
    %124 = vector.broadcast %cst_39 : f32 to vector<8x128xf32>
    %125 = arith.mulf %124, %123 : vector<8x128xf32>
    %126 = arith.negf %125 : vector<8x128xf32>
    %127 = math.exp %126 : vector<8x128xf32>
    %cst_40 = arith.constant 1.000000e+00 : f32
    %128 = vector.broadcast %cst_40 : f32 to vector<8x128xf32>
    %129 = arith.addf %128, %127 : vector<8x128xf32>
    %130 = arith.divf %128, %129 : vector<8x128xf32>
    %131 = arith.mulf %123, %130 : vector<8x128xf32>
    %132 = arith.truncf %131 : vector<8x128xf32> to vector<8x128xbf16>
    %c0_41 = arith.constant 0 : index
    %c0_42 = arith.constant 0 : index
    %133 = vector.load %arg12[%c0_41, %c0_42] : memref<128x32xbf16, #tpu.memory_space<vmem>>, vector<128x32xbf16>
    %cst_43 = arith.constant dense<0.000000e+00> : vector<8x32xf32>
    %134 = tpu.matmul %132, %133, %cst_43 {dimension_numbers = #tpu.dot_dimension_numbers<[1], [0], [0], [1], [0, 0, 1, 1], [], []>} : vector<8x128xbf16>, vector<128x32xbf16>, vector<8x32xf32> -> vector<8x32xf32>
    %c0_44 = arith.constant 0 : index
    %c0_45 = arith.constant 0 : index
    %135 = vector.load %arg13[%c0_44, %c0_45] : memref<1x32xf32, #tpu.memory_space<vmem>>, vector<1x32xf32>
    %136 = vector.broadcast %135 : vector<1x32xf32> to vector<8x32xf32>
    %137 = arith.addf %134, %136 : vector<8x32xf32>
    %138 = arith.addf %93, %137 : vector<8x32xf32>
    %139 = vector.shape_cast %138 : vector<8x32xf32> to vector<1x8x32xf32>
    %c0_46 = arith.constant 0 : index
    %c0_47 = arith.constant 0 : index
    %c0_48 = arith.constant 0 : index
    %140 = vector.load %arg14[%c0_46, %c0_47, %c0_48] : memref<1x8x32xf32, #tpu.memory_space<vmem>>, vector<1x8x32xf32>
    tpu.vector_store %arg14[%c0_46, %c0_47, %c0_48], %139 {strides = array<i32>} : memref<1x8x32xf32, #tpu.memory_space<vmem>>, vector<1x8x32xf32>,
    return
  }
  func.func @transform_0(%arg0: i32) -> (i32, i32, i32) {
    %c0_i32 = arith.constant 0 : i32
    %c0_i32_0 = arith.constant 0 : i32
    %c0_i32_1 = arith.constant 0 : i32
    return %arg0, %c0_i32, %c0_i32_0 : i32, i32, i32
  }
  func.func @transform_1(%arg0: i32) -> (i32, i32) {
    %c0_i32 = arith.constant 0 : i32
    %c0_i32_0 = arith.constant 0 : i32
    %c0_i32_1 = arith.constant 0 : i32
    return %c0_i32, %c0_i32_0 : i32, i32
  }
  func.func @transform_2(%arg0: i32) -> (i32, i32) {
    %c0_i32 = arith.constant 0 : i32
    %c0_i32_0 = arith.constant 0 : i32
    %c0_i32_1 = arith.constant 0 : i32
    return %c0_i32, %c0_i32_0 : i32, i32
  }
  func.func @transform_3(%arg0: i32) -> (i32, i32) {
    %c0_i32 = arith.constant 0 : i32
    %c0_i32_0 = arith.constant 0 : i32
    %c0_i32_1 = arith.constant 0 : i32
    return %c0_i32, %c0_i32_0 : i32, i32
  }
  func.func @transform_4(%arg0: i32) -> (i32, i32) {
    %c0_i32 = arith.constant 0 : i32
    %c0_i32_0 = arith.constant 0 : i32
    %c0_i32_1 = arith.constant 0 : i32
    return %c0_i32, %c0_i32_0 : i32, i32
  }
  func.func @transform_5(%arg0: i32) -> (i32, i32) {
    %c0_i32 = arith.constant 0 : i32
    %c0_i32_0 = arith.constant 0 : i32
    %c0_i32_1 = arith.constant 0 : i32
    return %c0_i32, %c0_i32_0 : i32, i32
  }
  func.func @transform_6(%arg0: i32) -> (i32, i32) {
    %c0_i32 = arith.constant 0 : i32
    %c0_i32_0 = arith.constant 0 : i32
    %c0_i32_1 = arith.constant 0 : i32
    return %c0_i32, %c0_i32_0 : i32, i32
  }
  func.func @transform_7(%arg0: i32) -> (i32, i32) {
    %c0_i32 = arith.constant 0 : i32
    %c0_i32_0 = arith.constant 0 : i32
    %c0_i32_1 = arith.constant 0 : i32
    return %c0_i32, %c0_i32_0 : i32, i32
  }
  func.func @transform_8(%arg0: i32) -> (i32, i32) {
    %c0_i32 = arith.constant 0 : i32
    %c0_i32_0 = arith.constant 0 : i32
    %c0_i32_1 = arith.constant 0 : i32
    return %c0_i32, %c0_i32_0 : i32, i32
  }
  func.func @transform_9(%arg0: i32) -> (i32, i32) {
    %c0_i32 = arith.constant 0 : i32
    %c0_i32_0 = arith.constant 0 : i32
    %c0_i32_1 = arith.constant 0 : i32
    return %c0_i32, %c0_i32_0 : i32, i32
  }
  func.func @transform_10(%arg0: i32) -> (i32, i32) {
    %c0_i32 = arith.constant 0 : i32
    %c0_i32_0 = arith.constant 0 : i32
    %c0_i32_1 = arith.constant 0 : i32
    return %c0_i32, %c0_i32_0 : i32, i32
  }
  func.func @transform_11(%arg0: i32) -> (i32, i32) {
    %c0_i32 = arith.constant 0 : i32
    %c0_i32_0 = arith.constant 0 : i32
    %c0_i32_1 = arith.constant 0 : i32
    return %c0_i32, %c0_i32_0 : i32, i32
  }
  func.func @transform_12(%arg0: i32) -> (i32, i32) {
    %c0_i32 = arith.constant 0 : i32
    %c0_i32_0 = arith.constant 0 : i32
    %c0_i32_1 = arith.constant 0 : i32
    return %c0_i32, %c0_i32_0 : i32, i32
  }
  func.func @transform_13(%arg0: i32) -> (i32, i32, i32) {
    %c0_i32 = arith.constant 0 : i32
    %c0_i32_0 = arith.constant 0 : i32
    %c0_i32_1 = arith.constant 0 : i32
    return %arg0, %c0_i32, %c0_i32_0 : i32, i32, i32
  }
}

</mosaic_0001>

<bundles_post_ra>
// kernel: tpu_custom_call.1
= control target key start
LH: loop header
LB: loop body
LE: loop exit
PB: predicated region body
PF: predicated region fallthrough
CT: control target
= control target key end

     0   :  { %s2046_s0 = inlined_call_operand.vmem [shape: f32[2,8,32], index: 0, kind: input, shape index: {}]   ;;  %s2047_s1 = inlined_call_operand.vmem [shape: f32[1,32], index: 1, kind: input, shape index: {}]   ;;  %s2048_s2 = inlined_call_operand.vmem [shape: f32[1,32], index: 2, kind: input, shape index: {}]   ;;  %s2049_s3 = inlined_call_operand.vmem [shape: bf16[32,96], index: 3, kind: input, shape index: {}]   ;;  %s2050_s4 = inlined_call_operand.vmem [shape: f32[1,96], index: 4, kind: input, shape index: {}]   ;;  %s2051_s5 = inlined_call_operand.vmem [shape: bf16[32,32], index: 5, kind: input, shape index: {}]   ;;  %s2052_s6 = inlined_call_operand.vmem [shape: f32[1,32], index: 6, kind: input, shape index: {}]   ;;  %s2053_s7 = inlined_call_operand.vmem [shape: f32[1,32], index: 7, kind: input, shape index: {}]   ;;  %s2054_s8 = inlined_call_operand.vmem [shape: f32[1,32], index: 8, kind: input, shape index: {}]   ;;  %s2055_s9 = inlined_call_operand.vmem [shape: bf16[32,128], index: 9, kind: input, shape index: {}]   ;;  %s2056_s10 = inlined_call_operand.vmem [shape: f32[1,128], index: 10, kind: input, shape index: {}]   ;;  %s2057_s11 = inlined_call_operand.vmem [shape: bf16[128,32], index: 11, kind: input, shape index: {}]   ;;  %s2058_s12 = inlined_call_operand.vmem [shape: f32[1,32], index: 12, kind: input, shape index: {}]   ;;  %s2059_s13 = inlined_call_operand.hbm [shape: f32[2,8,32], index: 13, kind: output, shape index: {}]  }
   0x1   :  { %2060 = sst [smem:[#allocation5_spill]] %s2046_s0 }
   0x2   :  { %2061 = sst [smem:[#allocation6_spill]] %s2047_s1 }
   0x3   :  { %2062 = sst [smem:[#allocation7_spill]] %s2048_s2 }
   0x4   :  { %18 = vsyncpa [#allocation3], 0 }
   0x5   :  { %20 = vsyncpa [#allocation3 + $0x1], 0  ;;  %s1764_s25 = smov 0   ;;  %s1766_s26 = smov 0  }
   0x6   :  { %s1768_s27 = smov 0   ;;  %s1770_s28 = smov 0  }
   0x7 LB: > { %s1785_s29 = sadd.s32 4294967295, %s1681_s28   ;;  %s1362_s30 = sadd.s32 4294967294, %s1681_s28   ;;  %s1681_s28 = sphi %s1770_s28, %s2071_s28   ;;  %s1677_s27 = sphi %s1768_s27, %s2070_s27   ;;  %s1673_s26 = sphi %s1766_s26, %s2069_s26   ;;  %s1669_s25 = sphi %s1764_s25, %s2068_s25  }
   0x8   : > { %s1789_s14 = sadd.s32 1, %s1681_s28   ;;  %s311_s15 = sadd.s32 1, %s1677_s27 }
   0x9   : > { %s308_s16 = ssub.s32 %s1681_s28, %s1789_s14  ;;  %p321_p0 = scmp.ne.s32.totalorder %s1677_s27, %s1673_s26 }
   0xa   : > { %p309_p1 = scmp.eq.s32.totalorder %s308_s16, 0  ;;  %p322_p2 = scmp.eq.s32.totalorder %s1785_s29, 1 }
   0xb   : > { %p327_p3 = scmp.ne.s32.totalorder %s1673_s26, %s1669_s25  ;;  %p328_p4 = scmp.eq.s32.totalorder %s1362_s30, 1 }
   0xc   : > { %s1800_s17 = scalar_select %p309_p1, %s1677_s27, %s311_s15  }
   0xd   : > { %p1802_p5 = por %p322_p2, %p321_p0  ;;  %p1806_p6 = por %p328_p4, %p327_p3 }
   0xe   : > { %p1365_p7 = scmp.ge.s32.totalorder %s1681_s28, 1  ;;  %p389_p8 = scmp.lt.s32.totalorder %s1681_s28, 3 }
  0x10   : > { %p390_p9 = pnand %p1365_p7, %p389_p8 }
  0x11   : > { %p432_p10 = scmp.lt.s32.totalorder (!%p390_p9), %s1785_s29, 1  ;;  %vm438_vm0 = vcmask (!%p390_p9), 261120   ;;  %s2065_s0 = sld [smem:[#allocation5_spill]] (!%p390_p9)  ;;  %v1581_v7 = vld [vmem:[%s2049_s3] sm:$0xff] (!%p390_p9)   ;;  %v1683_v8 = vmov (!%p390_p9), 0.0   ;;  %vm1684_vm1 = vmmov (!%p390_p9), 0  }
  0x12   : > { %393 = sbr.rel (%p390_p9) target bundleno = 2675 (0xa73), region = 72  ;;  %1440 = vmatprep.subr.bf16.mxu0 (!%p390_p9), %v1683_v8  ;;  %1444 = vmatprep.mubr.msk.bf16.mxu0 (!%p390_p9), %vm1684_vm1, %v1683_v8  ;;  %v1582_v9 = vld [vmem:[%s2049_s3 + $0x8] sm:$0xff] (!%p390_p9)   ;;  %s2066_s1 = sld [smem:[#allocation6_spill]] (!%p390_p9)  ;;  %v1370_v20 = vld [vmem:[%s2050_s4] ss:$0 sm:$0xff] (!%p390_p9)  ;;  %vm546_vm2 = vcmask (!%p390_p9), 64512  }
  0x13   : > { %1441 = vmatpush3.bf16.msra.mxu0 (!%p390_p9), %v1581_v7  ;;  %1460 = vmatprep.subr.bf16.mxu1 (!%p390_p9), %v1683_v8  ;;  %s2067_s2 = sld [smem:[#allocation7_spill]] (!%p390_p9)  ;;  %s1685_s16 = smov (!%p390_p9), 104   ;;  %vm794_vm3 = vcmask (!%p390_p9), 1043456   ;;  %vm998_vm4 = vcmask (!%p390_p9), 130048   ;;  %vm1001_vm5 = vcmask (!%p390_p9), 195584  }
  0x14   : > { %1442 = vmatprep.subr.bf16.mxu0 (!%p390_p9), %v1683_v8  ;;  %1462 = vmatprep.mubr.msk.bf16.mxu1 (!%p390_p9), %vm1684_vm1, %v1683_v8  ;;  %s1688_s22 = smov (!%p390_p9), 96   ;;  %s1689_s23 = smov (!%p390_p9), 64  }
  0x17   : > { %1443 = vmatpush3.bf16.msra.mxu0 (!%p390_p9), %v1582_v9 }
  0x18   : > { %1448 = vmatprep.subr.bf16.mxu0 (!%p390_p9), %v1683_v8  ;;  %v1368_v14 = vld [vmem:[%s2066_s1] ss:$0 sm:$0xff] (!%p390_p9) }
  0x19   : > { %s433_s20 = scalar_select %p432_p10, %s1785_s29, 1  ;;  %v1369_v16 = vld [vmem:[%s2067_s2] ss:$0 sm:$0xff] }
  0x1b   : > { %s1367_s21 = sshll.u32 %s433_s20, 3  ;;  %s1686_s20 = smov 120  }
  0x1c   : > { %s435_s24 = scalar_lea.vmem %s2065_s0, %s1367_s21  ;;  %s1687_s21 = smov 112  }
  0x1d   : > { %v1817_v0 = vld [vmem:[%s435_s24] sm:$0xff] }
  0x1e   : > { %v439_v1 = vsel %vm438_vm0, %v1817_v0, 0.0 }
  0x1f   : > { %440 = vadd.xlane.f32.xlu0 %v439_v1 }
  0xac   : > { %v441_v2 = vpop.xlane.xlu0 %440 }
  0xad   : > { %v443_v3 = vmul.f32 0.03125, %v441_v2 }
  0xaf   : > { %v444_v4 = vsub.f32 %v1817_v0, %v443_v3 }
  0xb1   : > { %v445_v5 = vmul.f32 %v444_v4, %v444_v4 }
  0xb3   : > { %v446_v6 = vsel %vm438_vm0, %v445_v5, 0.0 }
  0xb4   : > { %447 = vadd.xlane.f32.xlu0 %v446_v6 }
 0x141   : > { %v448_v10 = vpop.xlane.xlu0 %447 }
 0x142   : > { %v449_v11 = vmul.f32 0.03125, %v448_v10 }
 0x144   : > { %v450_v12 = vadd.f32 1e-05, %v449_v11 }
 0x146   : > { %1595 = vrsqrt.f32 %v450_v12 }
 0x150   : > { %v1596_v13 = vpop.eup %1595 }
 0x151   : > { %v452_v15 = vmul.f32 %v1596_v13, %v444_v4 }
 0x153   : > { %v460_v17 = vmul.f32 %v1368_v14, %v452_v15 }
 0x155   : > { %v468_v18 = vadd.f32 %v1369_v16, %v460_v17 }
 0x157   : > { %v469_v19 = vpack.c.bf16 %v468_v18, %v468_v18 }
 0x159   : > { %1445 = vmatmul.mubr.msk.bf16.vlgmr.msra.gmra.mrb[0].mxu0 %vm438_vm0, %v469_v19 }
 0x15a   : > { %1450 = vmatprep.mubr.msk.bf16.mxu0 %vm1684_vm1, %v1683_v8 }
 0x22c   : > { %v530_v21 = vpop.f32.mrb[0].mxu0 }
 0x22d   : > { %v531_v22 = vadd.f32 %v1370_v20, %v530_v21  ;;  %v1446_v23 = vpop.f32.mrb[1].mxu0 }
 0x22e   : > { %v533_v24 = vpop.f32.mrb[2].mxu0 }
 0x22f   : > { %v1849_v25 = vpack.c.bf16 %v531_v22, %v531_v22  ;;  %v1447_v26 = vpop.f32.mrb[3].mxu0 }
 0x231   : > { %542 = vrot.lane.b32.xlu0 %v1849_v25, %s1685_s16  ;;  %538 = vrot.lane.b32.xlu1 %v1849_v25, %s1686_s20  ;;  %s1690_s20 = smov 8   ;;  %s429_s16 = sand.u32 1, %s1673_s26  }
 0x235   : > { %540 = vrot.lane.b32.xlu1 %v1849_v25, %s1687_s21  ;;  %s1691_s21 = smov 16  }
 0x239   : > { %544 = vrot.lane.b32.xlu1 %v1849_v25, %s1688_s22 }
 0x2a3   : > { %v1855_v27 = vpop.permute.xlu1 %538  ;;  %v1861_v29 = vpop.permute.xlu0 %542 }
 0x2a4   : > { %593 = vrot.lane.b32.xlu1 %v1855_v27, %s1688_s22 }
 0x2a7   : > { %v1858_v28 = vpop.permute.xlu1 %540 }
 0x2a8   : > { %641 = vrot.lane.b32.xlu1 %v1858_v28, %s1688_s22 }
 0x2ab   : > { %v545_v30 = vpop.permute.xlu1 %544 }
 0x2ac   : > { %v551_v31 = vsel %vm546_vm2, %v545_v30, 0  ;;  %689 = vrot.lane.b32.xlu1 %v1861_v29, %s1688_s22  ;;  %s1692_s22 = smov 24  }
 0x2ad   : > { %1449 = vmatpush3.bf16.xpose.msra.mxu0 %v551_v31 }
 0x2ae   : > { %1454 = vmatprep.subr.bf16.mxu0 %v1683_v8 }
 0x2b4   : > { %1451 = vmatmul.mubr.msk.bf16.vlgmr.msra.gmra.mrb[4].mxu0 %vm546_vm2, %v1849_v25 }
 0x2b5   : > { %1456 = vmatprep.mubr.msk.bf16.mxu0 %vm1684_vm1, %v1683_v8 }
 0x316   : > { %v594_v32 = vpop.permute.xlu1 %593 }
 0x317   : > { %v599_v33 = vsel %vm546_vm2, %v594_v32, 0 }
 0x318   : > { %1455 = vmatpush3.bf16.xpose.msra.mxu0 %v599_v33 }
 0x319   : > { %1466 = vmatprep.subr.bf16.mxu0 %v1683_v8 }
 0x31a   : > { %v642_v34 = vpop.permute.xlu1 %641 }
 0x31b   : > { %v647_v35 = vsel %vm546_vm2, %v642_v34, 0 }
 0x31c   : > { %1461 = vmatpush3.bf16.xpose.msra.mxu1 %v647_v35 }
 0x31d   : > { %1472 = vmatprep.subr.bf16.mxu1 %v1683_v8 }
 0x31e   : > { %v690_v36 = vpop.permute.xlu1 %689 }
 0x31f   : > { %v695_v37 = vsel %vm546_vm2, %v690_v36, 0  ;;  %1457 = vmatmul.mubr.msk.bf16.vlgmr.msra.gmra.mrb[8].mxu0 %vm546_vm2, %v1855_v27 }
 0x320   : > { %1467 = vmatpush3.bf16.xpose.msra.mxu0 %v695_v37  ;;  %1468 = vmatprep.mubr.msk.bf16.mxu0 %vm1684_vm1, %v1683_v8 }
 0x321   : > { %1478 = vmatprep.subr.bf16.mxu0 %v1683_v8 }
 0x323   : > { %1463 = vmatmul.mubr.msk.bf16.vlgmr.msra.gmra.mrb[0].mxu1 %vm546_vm2, %v1858_v28 }
 0x324   : > { %1474 = vmatprep.mubr.msk.bf16.mxu1 %vm1684_vm1, %v1683_v8 }
 0x327   : > { %1469 = vmatmul.mubr.msk.bf16.vlgmr.msra.gmra.mrb[12].mxu0 %vm546_vm2, %v1861_v29 }
 0x328   : > { %1480 = vmatprep.mubr.msk.bf16.mxu0 %vm1684_vm1, %v1683_v8 }
 0x387   : > { %v587_v38 = vpop.f32.mrb[4].mxu0 }
 0x388   : > { %v737_v39 = vmul.f32 0.35355338, %v587_v38  ;;  %v1452_v40 = vpop.f32.mrb[5].mxu0 }
 0x389   : > { %v590_v41 = vpop.f32.mrb[6].mxu0 }
 0x38a   : > { %v1453_v42 = vpop.f32.mrb[7].mxu0  ;;  %v741_v43 = vsel %vm546_vm2, %v737_v39, -inf }
 0x38b   : > { %742 = vmax.xlane.f32.xlu1 %v741_v43 }
 0x3f2   : > { %v635_v44 = vpop.f32.mrb[8].mxu0 }
 0x3f3   : > { %v738_v45 = vmul.f32 0.35355338, %v635_v44  ;;  %v1458_v46 = vpop.f32.mrb[9].mxu0 }
 0x3f4   : > { %v638_v47 = vpop.f32.mrb[10].mxu0 }
 0x3f5   : > { %v1459_v48 = vpop.f32.mrb[11].mxu0  ;;  %v744_v49 = vsel %vm546_vm2, %v738_v45, -inf }
 0x3f6   : > { %v683_v50 = vpop.f32.mrb[0].mxu1  ;;  %745 = vmax.xlane.f32.xlu0 %v744_v49  ;;  %v1583_v48 = vld [vmem:[%s2051_s5] sm:$0xff]   ;;  %v1584_v49 = vld [vmem:[%s2051_s5 + $0x8] sm:$0xff]  }
 0x3f7   : > { %v739_v51 = vmul.f32 0.35355338, %v683_v50  ;;  %v1464_v52 = vpop.f32.mrb[1].mxu1 }
 0x3f8   : > { %v686_v53 = vpop.f32.mrb[2].mxu1 }
 0x3f9   : > { %v1465_v54 = vpop.f32.mrb[3].mxu1  ;;  %v747_v55 = vsel %vm546_vm2, %v739_v51, -inf }
 0x3fa   : > { %748 = vmax.xlane.f32.xlu1 %v747_v55  ;;  %v731_v56 = vpop.f32.mrb[12].mxu0 }
 0x3fb   : > { %v740_v57 = vmul.f32 0.35355338, %v731_v56  ;;  %v1470_v58 = vpop.f32.mrb[13].mxu0 }
 0x3fc   : > { %v734_v59 = vpop.f32.mrb[14].mxu0 }
 0x3fd   : > { %v1471_v60 = vpop.f32.mrb[15].mxu0  ;;  %v750_v61 = vsel %vm546_vm2, %v740_v57, -inf }
 0x3fe   : > { %751 = vmax.xlane.f32.xlu0 %v750_v61 }
 0x40b   : > { %789 = vrot.lane.b32.xlu1 %v1849_v25, %s1689_s23 }
 0x418   : > { %v743_v62 = vpop.xlane.xlu1 %742 }
 0x419   : > { %v753_v63 = vsub.f32 %v737_v39, %v743_v62 }
 0x41b   : > { %v757_v1 = vmul.f32 1.442695, %v753_v63 }
 0x41d   : > { %1597 = vpow2.f32 %v757_v1 }
 0x427   : > { %v1598_v2 = vpop.eup %1597 }
 0x428   : > { %v765_v3 = vsel %vm546_vm2, %v1598_v2, 0.0 }
 0x42f   : > { %766 = vadd.xlane.f32.xlu1 %v765_v3 }
 0x483   : > { %v746_v4 = vpop.xlane.xlu0 %745 }
 0x484   : > { %v754_v5 = vsub.f32 %v738_v45, %v746_v4 }
 0x486   : > { %v759_v6 = vmul.f32 1.442695, %v754_v5 }
 0x487   : > { %v749_v7 = vpop.xlane.xlu1 %748 }
 0x488   : > { %1599 = vpow2.f32 %v759_v6  ;;  %v755_v9 = vsub.f32 %v739_v51, %v749_v7 }
 0x48a   : > { %v761_v10 = vmul.f32 1.442695, %v755_v9 }
 0x48b   : > { %v790_v11 = vpop.permute.xlu1 %789  ;;  %v752_v12 = vpop.xlane.xlu0 %751 }
 0x48c   : > { %1601 = vpow2.f32 %v761_v10  ;;  %v796_v13 = vsel %vm794_vm3, %v790_v11, 0  ;;  %v756_v14 = vsub.f32 %v740_v57, %v752_v12  ;;  %v1385_v11 = vld [vmem:[%s2052_s6] ss:$0 sm:$0xff] }
 0x48d   : > { %1473 = vmatpush3.bf16.msra.mxu1 %v796_v13 }
 0x48e   : > { %v763_v15 = vmul.f32 1.442695, %v756_v14  ;;  %1484 = vmatprep.subr.bf16.mxu1 %v1683_v8 }
 0x490   : > { %1603 = vpow2.f32 %v763_v15 }
 0x492   : > { %v1600_v16 = vpop.eup %1599 }
 0x493   : > { %v768_v17 = vsel %vm546_vm2, %v1600_v16, 0.0 }
 0x494   : > { %769 = vadd.xlane.f32.xlu0 %v768_v17 }
 0x496   : > { %v1602_v18 = vpop.eup %1601 }
 0x497   : > { %v771_v19 = vsel %vm546_vm2, %v1602_v18, 0.0 }
 0x498   : > { %772 = vadd.xlane.f32.xlu1 %v771_v19 }
 0x49a   : > { %v1604_v20 = vpop.eup %1603 }
 0x49b   : > { %v774_v21 = vsel %vm546_vm2, %v1604_v20, 0.0 }
 0x49c   : > { %775 = vadd.xlane.f32.xlu0 %v774_v21 }
 0x4a9   : > { %886 = vrot.lane.b32.xlu1 %v1858_v28, %s1689_s23 }
 0x4ad   : > { %934 = vrot.lane.b32.xlu1 %v1861_v29, %s1689_s23 }
 0x4b2   : > { %838 = vrot.lane.b32.xlu0 %v1855_v27, %s1689_s23  ;;  %s1403_s23 = sshll.u32 %s1785_s29, 7  ;;  %s1290_s29 = scalar_lea.sflag [#allocation3], %s429_s16 }
 0x4b3   : > { %s2003_s1 = scalar_lea.hbm %s2059_s13, %s1403_s23 }
 0x4bc   : > { %v767_v22 = vpop.xlane.xlu1 %766 }
 0x4bd   : > { %1605 = vrcp.f32 %v767_v22 }
 0x4c7   : > { %v1606_v23 = vpop.eup %1605 }
 0x4c8   : > { %v781_v24 = vmul.f32 %v1606_v23, %v1598_v2  ;;  %v1586_v23 = vld [vmem:[%s2055_s9 + $0x8] sm:$0xff]  }
 0x4ca   : > { %v785_v25 = vpack.c.bf16 %v781_v24, %v781_v24 }
 0x4cc   : > { %1475 = vmatmul.mubr.msk.bf16.vlgmr.msra.gmra.mrb[4].mxu1 %vm546_vm2, %v785_v25 }
 0x4cd   : > { %1486 = vmatprep.mubr.msk.bf16.mxu1 %vm1684_vm1, %v1683_v8 }
 0x521   : > { %v770_v26 = vpop.xlane.xlu0 %769 }
 0x522   : > { %1607 = vrcp.f32 %v770_v26 }
 0x525   : > { %v773_v30 = vpop.xlane.xlu1 %772 }
 0x526   : > { %1609 = vrcp.f32 %v773_v30 }
 0x529   : > { %v887_v28 = vpop.permute.xlu1 %886  ;;  %v776_v31 = vpop.xlane.xlu0 %775 }
 0x52a   : > { %v892_v29 = vsel %vm794_vm3, %v887_v28, 0  ;;  %1611 = vrcp.f32 %v776_v31  ;;  %v1386_v28 = vld [vmem:[%s2053_s7] ss:$0 sm:$0xff] }
 0x52b   : > { %1485 = vmatpush3.bf16.msra.mxu1 %v892_v29  ;;  %v1387_v29 = vld [vmem:[%s2054_s8] ss:$0 sm:$0xff] }
 0x52c   : > { %v1608_v27 = vpop.eup %1607  ;;  %1496 = vmatprep.subr.bf16.mxu1 %v1683_v8 }
 0x52d   : > { %v782_v32 = vmul.f32 %v1608_v27, %v1600_v16  ;;  %v839_v33 = vpop.permute.xlu0 %838  ;;  %v935_v35 = vpop.permute.xlu1 %934 }
 0x52e   : > { %v844_v34 = vsel %vm794_vm3, %v839_v33, 0  ;;  %v940_v39 = vsel %vm794_vm3, %v935_v35, 0  ;;  %v1588_v35 = vld [vmem:[%s2057_s11 + $0x8] sm:$0xff]  }
 0x52f   : > { %1479 = vmatpush3.bf16.msra.mxu0 %v844_v34  ;;  %v786_v36 = vpack.c.bf16 %v782_v32, %v782_v32  ;;  %v1587_v34 = vld [vmem:[%s2057_s11] sm:$0xff]  }
 0x530   : > { %v1610_v37 = vpop.eup %1609  ;;  %1490 = vmatprep.subr.bf16.mxu0 %v1683_v8 }
 0x531   : > { %v783_v38 = vmul.f32 %v1610_v37, %v1602_v18  ;;  %v1590_v37 = vld [vmem:[%s2057_s11 + $0x18] sm:$0xff]  }
 0x532   : > { %1481 = vmatmul.mubr.msk.bf16.vlgmr.msra.gmra.mrb[16].mxu0 %vm546_vm2, %v786_v36  ;;  %v1589_v36 = vld [vmem:[%s2057_s11 + $0x10] sm:$0xff]  }
 0x533   : > { %1491 = vmatpush3.bf16.msra.mxu0 %v940_v39  ;;  %v787_v40 = vpack.c.bf16 %v783_v38, %v783_v38  ;;  %1492 = vmatprep.mubr.msk.bf16.mxu0 %vm1684_vm1, %v1683_v8  ;;  %v1591_v38 = vld [vmem:[%s2057_s11 + $0x20] sm:$0xff]   ;;  %v1592_v39 = vld [vmem:[%s2057_s11 + $0x28] sm:$0xff]  }
 0x534   : > { %v1612_v41 = vpop.eup %1611  ;;  %1504 = vmatprep.subr.bf16.mxu0 %v1683_v8 }
 0x535   : > { %v784_v42 = vmul.f32 %v1612_v41, %v1604_v20  ;;  %1487 = vmatmul.mubr.msk.bf16.vlgmr.msra.gmra.mrb[8].mxu1 %vm546_vm2, %v787_v40  ;;  %v1593_v40 = vld [vmem:[%s2057_s11 + $0x30] sm:$0xff]   ;;  %v1594_v41 = vld [vmem:[%s2057_s11 + $0x38] sm:$0xff]  }
 0x536   : > { %1500 = vmatprep.mubr.msk.bf16.mxu1 %vm1684_vm1, %v1683_v8  ;;  %1497 = vmatpush3.bf16.msra.mxu1 %v1583_v48 }
 0x537   : > { %v788_v43 = vpack.c.bf16 %v784_v42, %v784_v42  ;;  %1498 = vmatprep.subr.bf16.mxu1 %v1683_v8  ;;  %v1388_v42 = vld [vmem:[%s2056_s10] ss:$0 sm:$0xff] }
 0x53a   : > { %1493 = vmatmul.mubr.msk.bf16.vlgmr.msra.gmra.mrb[20].mxu0 %vm546_vm2, %v788_v43  ;;  %1499 = vmatpush3.bf16.msra.mxu1 %v1584_v49 }
 0x53b   : > { %1508 = vmatprep.mubr.msk.bf16.mxu0 %vm1684_vm1, %v1683_v8  ;;  %1512 = vmatprep.subr.bf16.mxu1 %v1683_v8 }
 0x59f   : > { %v832_v44 = vpop.f32.mrb[4].mxu1 }
 0x5a0   : > { %v1476_v45 = vpop.f32.mrb[5].mxu1  ;;  %v982_v3 = vpack.c.bf16 %v832_v44, %v832_v44 }
 0x5a1   : > { %v835_v46 = vpop.f32.mrb[6].mxu1 }
 0x5a2   : > { %v1477_v47 = vpop.f32.mrb[7].mxu1 }
 0x605   : > { %v880_v50 = vpop.f32.mrb[16].mxu0 }
 0x606   : > { %v983_v51 = vpack.c.bf16 %v880_v50, %v880_v50  ;;  %v1482_v52 = vpop.f32.mrb[17].mxu0 }
 0x607   : > { %v883_v53 = vpop.f32.mrb[18].mxu0 }
 0x608   : > { %v928_v54 = vpop.f32.mrb[8].mxu1  ;;  %987 = vrot.lane.b32.xlu0 %v983_v51, %s1690_s20  ;;  %v1483_v55 = vpop.f32.mrb[19].mxu0  ;;  %s1366_s20 = sshll.u32 %s429_s16, 3 }
 0x609   : > { %v984_v56 = vpack.c.bf16 %v928_v54, %v928_v54  ;;  %v1488_v57 = vpop.f32.mrb[9].mxu1  ;;  %v1393_v54 = vld [vmem:[%s2058_s12] ss:$0 sm:$0xff]  ;;  %s431_s24 = scalar_lea.vmem [#allocation2], %s1366_s20 }
 0x60a   : > { %v931_v58 = vpop.f32.mrb[10].mxu1  ;;  %s1303_s30 = sshll.u32 %s431_s24, 4  ;;  %s2005_s30 = int_to_ptr.vmem [resolvable:$true] %s1303_s30 }
 0x60b   : > { %990 = vrot.lane.b32.xlu1 %v984_v56, %s1691_s21  ;;  %v1489_v59 = vpop.f32.mrb[11].mxu1  ;;  %s1619_s20 = scalar_lea.vmem %s2005_s30, 128  ;;  %s1693_s21 = smov [#allocation2]  }
 0x60c   : > { %p1620_p11 = scmp.ne.s32.totalorder %s2005_s30, %s1619_s20 }
 0x60d   : > { %v976_v60 = vpop.f32.mrb[20].mxu0 }
 0x60e   : > { %v985_v61 = vpack.c.bf16 %v976_v60, %v976_v60  ;;  %v1494_v62 = vpop.f32.mrb[21].mxu0  ;;  %p1621_p12 = pnand %p1620_p11, %p1802_p5 }
 0x60f   : > { %v979_v63 = vpop.f32.mrb[22].mxu0 }
 0x610   : > { %993 = vrot.lane.b32.xlu0 %v985_v61, %s1692_s22  ;;  %v1495_v1 = vpop.f32.mrb[23].mxu0  ;;  %p1622_p13 = pneg %p1621_p12  ;;  %s1623_s22 = sshll.u32 %s1693_s21, 4  ;;  %s1624_s22 = int_to_ptr.vmem [resolvable:$false] %s1623_s22 }
 0x611   : > { %s1625_s2 = scalar_lea.vmem %s1624_s22, 256  ;;  %p1626_p0 = scmp.lt.s32.totalorder %s2005_s30, %s1624_s22 }
 0x612   : > { %p1627_p1 = scmp.lt.s32.totalorder %s1625_s2, %s1619_s20 }
 0x614   : > { %p1628_p2 = por %p1627_p1, %p1626_p0 }
 0x616   : > { %p1629_p3 = pnand %p1628_p2, %p1622_p13 }
 0x67a   : > { %v988_v2 = vpop.permute.xlu0 %987 }
 0x67b   : > { %v997_v5 = vsel %vm546_vm2, %v982_v3, %v988_v2 }
 0x67d   : > { %v991_v4 = vpop.permute.xlu1 %990 }
 0x67e   : > { %v1000_v6 = vsel %vm998_vm4, %v997_v5, %v991_v4 }
 0x682   : > { %v994_v7 = vpop.permute.xlu0 %993 }
 0x683   : > { %v1003_v9 = vsel %vm1001_vm5, %v1000_v6, %v994_v7 }
 0x684   : > { %1501 = vmatmul.mubr.msk.bf16.vlgmr.msra.gmra.mrb[12].mxu1 %vm438_vm0, %v1003_v9 }
 0x685   : > { %1528 = vmatprep.mubr.msk.bf16.mxu1 %vm1684_vm1, %v1683_v8  ;;  %1513 = vmatpush3.bf16.msra.mxu1 %v1587_v34 }
 0x686   : > { %1514 = vmatprep.subr.bf16.mxu1 %v1683_v8 }
 0x689   : > { %1515 = vmatpush3.bf16.msra.mxu1 %v1588_v35 }
 0x68a   : > { %1516 = vmatprep.subr.bf16.mxu1 %v1683_v8 }
 0x68d   : > { %1517 = vmatpush3.bf16.msra.mxu1 %v1589_v36 }
 0x68e   : > { %1518 = vmatprep.subr.bf16.mxu1 %v1683_v8 }
 0x691   : > { %1519 = vmatpush3.bf16.msra.mxu1 %v1590_v37 }
 0x692   : > { %1520 = vmatprep.subr.bf16.mxu1 %v1683_v8 }
 0x695   : > { %1521 = vmatpush3.bf16.msra.mxu1 %v1591_v38 }
 0x696   : > { %1522 = vmatprep.subr.bf16.mxu1 %v1683_v8 }
 0x699   : > { %1523 = vmatpush3.bf16.msra.mxu1 %v1592_v39 }
 0x69a   : > { %1524 = vmatprep.subr.bf16.mxu1 %v1683_v8 }
 0x69d   : > { %1525 = vmatpush3.bf16.msra.mxu1 %v1593_v40 }
 0x69e   : > { %1526 = vmatprep.subr.bf16.mxu1 %v1683_v8 }
 0x6a1   : > { %1527 = vmatpush3.bf16.msra.mxu1 %v1594_v41 }
 0x757   : > { %v1056_v10 = vpop.f32.mrb[12].mxu1 }
 0x758   : > { %v1062_v12 = vadd.f32 %v1056_v10, %v1817_v0  ;;  %v1502_v13 = vpop.f32.mrb[13].mxu1  ;;  %v1585_v0 = vld [vmem:[%s2055_s9] sm:$0xff]  }
 0x759   : > { %v1059_v14 = vpop.f32.mrb[14].mxu1  ;;  %1505 = vmatpush3.bf16.msra.mxu0 %v1585_v0 }
 0x75a   : > { %v1940_v15 = vadd.f32 %v1385_v11, %v1062_v12  ;;  %v1503_v16 = vpop.f32.mrb[15].mxu1  ;;  %1506 = vmatprep.subr.bf16.mxu0 %v1683_v8 }
 0x75c   : > { %v1071_v17 = vsel %vm438_vm0, %v1940_v15, 0.0 }
 0x75d   : > { %1072 = vadd.xlane.f32.xlu1 %v1071_v17  ;;  %1507 = vmatpush3.bf16.msra.mxu0 %v1586_v23 }
 0x7ea   : > { %v1073_v18 = vpop.xlane.xlu1 %1072 }
 0x7eb   : > { %v1074_v19 = vmul.f32 0.03125, %v1073_v18 }
 0x7ed   : > { %v1075_v20 = vsub.f32 %v1940_v15, %v1074_v19 }
 0x7ef   : > { %v1076_v21 = vmul.f32 %v1075_v20, %v1075_v20 }
 0x7f1   : > { %v1077_v22 = vsel %vm438_vm0, %v1076_v21, 0.0 }
 0x7f2   : > { %1078 = vadd.xlane.f32.xlu0 %v1077_v22 }
 0x87f   : > { %v1079_v24 = vpop.xlane.xlu0 %1078 }
 0x880   : > { %v1080_v25 = vmul.f32 0.03125, %v1079_v24 }
 0x882   : > { %v1081_v26 = vadd.f32 1e-05, %v1080_v25 }
 0x884   : > { %1613 = vrsqrt.f32 %v1081_v26 }
 0x88e   : > { %v1614_v30 = vpop.eup %1613 }
 0x88f   : > { %v1083_v31 = vmul.f32 %v1614_v30, %v1075_v20 }
 0x891   : > { %v1091_v27 = vmul.f32 %v1386_v28, %v1083_v31 }
 0x893   : > { %v1099_v32 = vadd.f32 %v1387_v29, %v1091_v27 }
 0x895   : > { %v1100_v33 = vpack.c.bf16 %v1099_v32, %v1099_v32 }
 0x897   : > { %1509 = vmatmul.mubr.msk.bf16.vlgmr.msra.gmra.mrb[24].mxu0 %vm438_vm0, %v1100_v33 }
 0x96a   : > { %v1161_v43 = vpop.f32.mrb[24].mxu0 }
 0x96b   : > { %v1162_v44 = vadd.f32 %v1388_v42, %v1161_v43  ;;  %v1510_v45 = vpop.f32.mrb[25].mxu0 }
 0x96c   : > { %v1164_v46 = vpop.f32.mrb[26].mxu0 }
 0x96d   : > { %v1392_v47 = vmul.f32 -1.702, %v1162_v44  ;;  %v1511_v48 = vpop.f32.mrb[27].mxu0 }
 0x96f   : > { %v1169_v49 = vmul.f32 1.442695, %v1392_v47 }
 0x971   : > { %1615 = vpow2.f32 %v1169_v49 }
 0x97b   : > { %v1616_v8 = vpop.eup %1615 }
 0x97c   : > { %v1171_v50 = vadd.f32 1.0, %v1616_v8 }
 0x97e   : > { %1617 = vrcp.f32 %v1171_v50 }
 0x988   : > { %v1618_v51 = vpop.eup %1617 }
 0x989   : > { %v1174_v52 = vmul.f32 %v1618_v51, %v1162_v44 }
 0x98b   : > { %v1175_v53 = vpack.c.bf16 %v1174_v52, %v1174_v52 }
 0x98d   : > { %1529 = vmatmul.mubr.bf16.vlgmr.msra.gmra.mrb[16].mxu1 %v1175_v53 }
 0xa60   : > { %v1281_v55 = vpop.f32.mrb[16].mxu1 }
 0xa61   : > { %v1282_v56 = vadd.f32 %v1393_v54, %v1281_v55  ;;  %v1530_v57 = vpop.f32.mrb[17].mxu1 }
 0xa62   : > { %v1284_v58 = vpop.f32.mrb[18].mxu1 }
 0xa63   : > { %v1287_v59 = vadd.f32 %v1282_v56, %v1940_v15  ;;  %v1531_v60 = vpop.f32.mrb[19].mxu1 }
 0xa65   : > { %1288 = vst.msk [vmem:[%s431_s24] sm:$0xff] %vm438_vm0, %v1287_v59 }
 0xa66   : > { %1632 = shalt.err (!%p1629_p3)
}
 0xa67   : > { %s1633_s0 = scalar_lea.hbm %s2003_s1, 128  ;;  %s1637_s24 = scalar_lea.hbm %s2059_s13, 256 }
 0xa68   : > { %p1634_p4 = scmp.ne.s32.totalorder %s2003_s1, %s1633_s0  ;;  %p1638_p9 = scmp.lt.u32.totalorder %s2003_s1, %s2059_s13 }
 0xa69   : > { %p1639_p10 = scmp.lt.u32.totalorder %s1637_s24, %s1633_s0  ;;  %p1641_p12 = scmp.lt.u32.totalorder %s1633_s0, %s2003_s1 }
 0xa6a   : > { %p1635_p7 = pnand %p1634_p4, %p1802_p5 }
 0xa6b   : > { %p1640_p11 = por %p1639_p10, %p1638_p9 }
 0xa6c   : > { %p1636_p8 = pneg %p1635_p7 }
 0xa6d   : > { %p1642_p13 = por %p1641_p12, %p1640_p11 }
 0xa6f   : > { %p1643_p0 = pnand %p1642_p13, %p1636_p8 }
 0xa71   : > { %1646 = shalt.err (!%p1643_p0)
}
 0xa72   : > { %1532 = dma.vmem_to_hbm [thread:$0]  (%p1802_p5), %s2005_s30, 128, %s2003_s1, %s1290_s29  }
 0xa73 PF: > { %p1538_p1 = scmp.ge.s32.totalorder %s1681_s28, 2  ;;  %s1315_s2 = sand.u32 1, %s1669_s25  }
 0xa74   : > { %s1316_s20 = scalar_lea.sflag [#allocation3], %s1315_s2 }
 0xa75   : > { %p1535_p2 = pnand %p1538_p1, %p1806_p6 }
 0xa77   : > { %1664 = dma.done.wait (!%p1535_p2), %s1316_s20, 128  }
 0xa78   : > { %1666 = vsyncadd (!%p1535_p2), %s1316_s20, 4294967168  ;;  %p23_p3 = scmp.ge.s32.totalorder %s1789_s14, 4   ;;  %s2068_s25 = smov %s1673_s26 }
 0xa79   : > { %s2069_s26 = smov %s1677_s27  ;;  %s2070_s27 = smov %s1800_s17 }
 0xa7a   : > { %s2071_s28 = smov %s1789_s14  ;;  %25 = sbr.rel (!%p23_p3) target bundleno = 7 (0x7), region = 107 }
 0xa81   :  { %1321 = vsyncpa [#allocation3], 1 }
 0xa82   :  { %1323 = vsyncpa [#allocation3 + $0x1], 1 }

</bundles_post_ra>
